<compile_context>
chip_gen: v6e
topology: v6e:2x2x1
jax: 0.10.0
libtpu: 0.0.40
codegen_flags: <defaults>
</compile_context>

<pallas_src>
import jax
import jax.numpy as jnp
from jax.experimental import pallas as pl
from jax.experimental.pallas import tpu as pltpu


def _round_up(x, m):
    return (x + m - 1) // m * m


def _choose_tk(K):
    return min(256, _round_up(K, 128))


_VMEM_LIMIT = 32 * 1024 * 1024  # explicit so tile choices stay inside v7x's budget


# --------------------------- Pallas kernels ---------------------------------

def pallas_conv_matmul(xm, wp, tk):
    """xm: [M, K] bf16, wp: [Kp, Np] bf16 (pre-padded).

    Returns (y [Mp, Np] f32, stats [mt, 8, Np] f32) where stats[:, 0] is the
    per-M-tile per-channel sum of y and stats[:, 1] the sum of squares.
    """
    M, K = xm.shape
    Kp, Np = wp.shape
    tm = min(128, _round_up(M, 8))
    tn = min(256, Np)
    Mp = _round_up(M, tm)
    if (Mp, Kp) != (M, K):
        xm = jnp.pad(xm, ((0, Mp - M), (0, Kp - K)))
    mt, nt, kt = Mp // tm, Np // tn, Kp // tk

    def kernel(x_ref, w_ref, y_ref, st_ref, acc_ref):
        @pl.when(pl.program_id(2) == 0)
        def _():
            acc_ref[...] = jnp.zeros_like(acc_ref)

        acc_ref[...] += jnp.dot(x_ref[...], w_ref[...],
                                preferred_element_type=jnp.float32)

        @pl.when(pl.program_id(2) == pl.num_programs(2) - 1)
        def _():
            acc = acc_ref[...]
            y_ref[...] = acc
            # BN statistics ride the XLU while the MXU runs: per-channel sum / sumsq.
            s = jnp.sum(acc, axis=0, keepdims=True)
            ss = jnp.sum(acc * acc, axis=0, keepdims=True)
            row = jax.lax.broadcasted_iota(jnp.int32, (8, tn), 0)
            st = jnp.where(row == 0,
                           jnp.broadcast_to(s, (8, tn)),
                           jnp.broadcast_to(ss, (8, tn)))
            st_ref[0] = st

    return pl.pallas_call(
        kernel,
        out_shape=(jax.ShapeDtypeStruct((Mp, Np), jnp.float32),
                   jax.ShapeDtypeStruct((mt, 8, Np), jnp.float32)),
        grid_spec=pltpu.PrefetchScalarGridSpec(
            num_scalar_prefetch=0,
            grid=(mt, nt, kt),
            in_specs=[pl.BlockSpec((tm, tk), lambda i, j, k: (i, k)),
                      pl.BlockSpec((tk, tn), lambda i, j, k: (k, j))],
            out_specs=(pl.BlockSpec((tm, tn), lambda i, j, k: (i, j)),
                       pl.BlockSpec((1, 8, tn), lambda i, j, k: (i, 0, j))),
            scratch_shapes=[pltpu.VMEM((tm, tn), jnp.float32)]),
        compiler_params=pltpu.CompilerParams(
            dimension_semantics=("parallel", "parallel", "arbitrary"),
            vmem_limit_bytes=_VMEM_LIMIT),
    )(xm, wp)


def pallas_bn_mish(y, stats, gamma_p, beta_p, m_count):
    """y: [Mp, Np] f32, stats: [8, Np] f32 (row0=sum, row1=sumsq),
    gamma_p/beta_p: [1, Np] f32.  BN affine is derived in-kernel (count is static)."""
    Mp, Np = y.shape
    tm = min(128, Mp)
    tn = min(256, Np)
    inv_m = 1.0 / float(m_count)

    def kernel(y_ref, st_ref, g_ref, b_ref, o_ref):
        mean = st_ref[0:1, :] * inv_m
        var = jnp.maximum(st_ref[1:2, :] * inv_m - mean * mean, 0.0)
        scale = g_ref[...] * jax.lax.rsqrt(var + 1e-5)
        bias = b_ref[...] - mean * scale
        z = y_ref[...] * scale + bias
        # Mish-variant z + tanh(softplus(z)) with a single exp:
        #   t = exp(-|z|);  z>=0: tanh(sp) = (1+2t)/(1+2t+2t^2)
        #                   z<0 : tanh(sp) = (t^2+2t)/(t^2+2t+2)
        t = jnp.exp(-jnp.abs(z))
        pos = z >= 0.0
        num = jnp.where(pos, 1.0 + 2.0 * t, t * (t + 2.0))
        den = num + jnp.where(pos, 2.0 * t * t, 2.0)
        o_ref[...] = z + num * pl.reciprocal(den, approx=True)

    return pl.pallas_call(
        kernel,
        out_shape=jax.ShapeDtypeStruct((Mp, Np), jnp.float32),
        grid_spec=pltpu.PrefetchScalarGridSpec(
            num_scalar_prefetch=0,
            grid=(Mp // tm, Np // tn),
            in_specs=[pl.BlockSpec((tm, tn), lambda i, j: (i, j)),
                      pl.BlockSpec((8, tn), lambda i, j: (0, j)),
                      pl.BlockSpec((1, tn), lambda i, j: (0, j)),
                      pl.BlockSpec((1, tn), lambda i, j: (0, j))],
            out_specs=pl.BlockSpec((tm, tn), lambda i, j: (i, j))),
        compiler_params=pltpu.CompilerParams(
            dimension_semantics=("parallel", "parallel"),
            vmem_limit_bytes=_VMEM_LIMIT),
    )(y, stats, gamma_p, beta_p)


# --------------------------- JAX glue (im2col etc.) -------------------------

def extract_patches(x, k, stride):
    """x: [N, H, W, C] NHWC -> [N, Ho, Wo, k*k*C], padding = k // 2 (like Conv2d)."""
    if k == 1 and stride == 1:
        return x
    pad = k // 2
    N, H, W, C = x.shape
    xp = jnp.pad(x, ((0, 0), (pad, pad), (pad, pad), (0, 0)))
    Ho = (H + 2 * pad - k) // stride + 1
    Wo = (W + 2 * pad - k) // stride + 1
    cols = []
    for dh in range(k):
        for dw in range(k):
            cols.append(xp[:, dh:dh + stride * Ho:stride,
                           dw:dw + stride * Wo:stride, :])
    return jnp.concatenate(cols, axis=-1)


# --------------------------- Module: block_CBM ------------------------------

def init_cbm(key, cin, cout, k, stride=1):
    n = k * k * cout                                   # matches PyTorch init in __init__
    w = jax.random.normal(key, (k, k, cin, cout), jnp.float32) * jnp.sqrt(2.0 / n)
    K = k * k * cin
    tk = _choose_tk(K)
    Kp = _round_up(K, tk)
    Np = _round_up(cout, 128)
    # Pre-pad + pre-cast the weight once (bf16 MXU inputs, f32 accumulation).
    wmat_p = jnp.pad(w.reshape(K, cout), ((0, Kp - K), (0, Np - cout))
                     ).astype(jnp.bfloat16)
    return {"wmat_p": wmat_p,
            "gamma_p": jnp.ones((1, Np), jnp.float32),   # BatchNorm weight = 1
            "beta_p": jnp.zeros((1, Np), jnp.float32),   # BatchNorm bias   = 0
            "k": k, "stride": stride, "cout": cout, "tk": tk}


def cbm_forward(params, x):
    k, s, cout = params["k"], params["stride"], params["cout"]
    xb = x.astype(jnp.bfloat16)                        # half the im2col/matmul bytes
    patches = extract_patches(xb, k, s)
    N, Ho, Wo, K = patches.shape
    M = N * Ho * Wo
    xm = patches.reshape(M, K)

    y, stats = pallas_conv_matmul(xm, params["wmat_p"], params["tk"])
    stats_red = stats[0] if stats.shape[0] == 1 else jnp.sum(stats, axis=0)

    out = pallas_bn_mish(y, stats_red, params["gamma_p"], params["beta_p"], M)
    Mp, Np = out.shape
    if Mp != M or Np != cout:                          # only when padding was needed
        out = out[:M, :cout]
    return out.reshape(N, Ho, Wo, cout)


def cbm_reference(params, x):
    """Pure-JAX reference for one CBM block (same bf16 inputs, exact activation)."""
    k, s, cout = params["k"], params["stride"], params["cout"]
    patches = extract_patches(x.astype(jnp.bfloat16), k, s)
    N, Ho, Wo, K = patches.shape
    xm = patches.reshape(N * Ho * Wo, K).astype(jnp.float32)
    w = params["wmat_p"][:K, :cout].astype(jnp.float32)
    y = xm @ w
    mean = jnp.mean(y, axis=0)
    var = jnp.var(y, axis=0)
    z = (y - mean) / jnp.sqrt(var + 1e-5)              # gamma=1, beta=0
    out = z + jnp.tanh(jax.nn.softplus(z))
    return out.reshape(N, Ho, Wo, cout)


# --------------------------- Module: block_Res ------------------------------

def init_res(key, channels, hidden=None):
    if hidden is None:
        hidden = channels
    k0, k1 = jax.random.split(key)
    return [init_cbm(k0, channels, hidden, 1),
            init_cbm(k1, hidden, channels, 3)]


def res_forward(params, x):
    h = cbm_forward(params[0], x)
    h = cbm_forward(params[1], h)
    return x + h


# --------------------------- Module: block_Resbody --------------------------

def init_resbody(key, cin, cout, num_res, first):
    ks = iter(jax.random.split(key, 16))
    p = {"first": first, "down": init_cbm(next(ks), cin, cout, 3, stride=2)}
    if first:
        p["split0"] = init_cbm(next(ks), cout, cout, 1)
        p["split1"] = init_cbm(next(ks), cout, cout, 1)
        p["res"] = [init_res(next(ks), cout, hidden=cout // 2)]
        p["blocks_tail"] = init_cbm(next(ks), cout, cout, 1)
        p["concat"] = init_cbm(next(ks), cout * 2, cout, 1)
    else:
        p["split0"] = init_cbm(next(ks), cout, cout // 2, 1)
        p["split1"] = init_cbm(next(ks), cout, cout // 2, 1)
        p["res"] = [init_res(next(ks), cout // 2) for _ in range(num_res)]
        p["blocks_tail"] = init_cbm(next(ks), cout // 2, cout // 2, 1)
        p["concat"] = init_cbm(next(ks), cout, cout, 1)
    return p


def resbody_forward(p, x):
    x = cbm_forward(p["down"], x)
    x0 = cbm_forward(p["split0"], x)
    x1 = cbm_forward(p["split1"], x)
    for r in p["res"]:
        x1 = res_forward(r, x1)
    x1 = cbm_forward(p["blocks_tail"], x1)
    x = jnp.concatenate([x1, x0], axis=-1)             # torch.cat(dim=1) == channel axis
    return cbm_forward(p["concat"], x)


# --------------------------- Module: CSPDarkNet -----------------------------

def init_cspdarknet(key, layers):
    keys = jax.random.split(key, 6)
    inplanes = 32
    fc = [64, 128, 256, 512, 1024]
    return {
        "conv1": init_cbm(keys[0], 3, inplanes, 3, stride=1),
        "stages": [
            init_resbody(keys[1], inplanes, fc[0], layers[0], first=True),
            init_resbody(keys[2], fc[0], fc[1], layers[1], first=False),
            init_resbody(keys[3], fc[1], fc[2], layers[2], first=False),
            init_resbody(keys[4], fc[2], fc[3], layers[3], first=False),
            init_resbody(keys[5], fc[3], fc[4], layers[4], first=False),
        ],
    }


def cspdarknet_forward(p, x_nchw):
    x = jnp.transpose(x_nchw, (0, 2, 3, 1))            # NCHW -> NHWC
    x = cbm_forward(p["conv1"], x)
    x = resbody_forward(p["stages"][0], x)
    x = resbody_forward(p["stages"][1], x)
    out3 = resbody_forward(p["stages"][2], x)
    out4 = resbody_forward(p["stages"][3], out3)
    out5 = resbody_forward(p["stages"][4], out4)
    to_nchw = lambda t: jnp.transpose(t, (0, 3, 1, 2))
    return to_nchw(out3), to_nchw(out4), to_nchw(out5)


# --------------------------- main --------------------------------------------

if __name__ == "__main__":
    key = jax.random.PRNGKey(0)
    pkey, xkey, tkey = jax.random.split(key, 3)

    # Small correctness check of the fused conv + BN-stats + Mish path.
    tparams = init_cbm(jax.random.PRNGKey(42), 32, 64, 3, stride=1)
    tx = jax.random.normal(tkey, (2, 8, 8, 32), jnp.float32)
    got = cbm_forward(tparams, tx)
    ref = cbm_reference(tparams, tx)
    err = float(jnp.max(jnp.abs(got - ref)))
    assert err < 5e-2, f"CBM mismatch: max abs err {err}"

    # Channels are fixed by the module (32 -> 64/128/256/512/1024); keep spatial small.
    params = init_cspdarknet(pkey, layers=[1, 1, 1, 1, 1])
    x = jax.random.normal(xkey, (2, 3, 32, 32), jnp.float32)   # NCHW like PyTorch

    out3, out4, out5 = cspdarknet_forward(params, x)
    jax.block_until_ready((out3, out4, out5))

    assert out3.shape == (2, 256, 4, 4), out3.shape
    assert out4.shape == (2, 512, 2, 2), out4.shape
    assert out5.shape == (2, 1024, 1, 1), out5.shape
    assert bool(jnp.all(jnp.isfinite(out3)))
    assert bool(jnp.all(jnp.isfinite(out4)))
    assert bool(jnp.all(jnp.isfinite(out5)))

    print("KERNEL_OK")
</pallas_src>

<mosaic_0001>
module attributes {stable_mosaic.version = 11 : i64} {
  func.func @kernel(%arg0: i32, %arg1: i32, %arg2: i32, %arg3: memref<128x256xbf16, #tpu.memory_space<vmem>>, %arg4: memref<256x128xbf16, #tpu.memory_space<vmem>>, %arg5: memref<128x128xf32, #tpu.memory_space<vmem>>, %arg6: memref<1x8x128xf32, #tpu.memory_space<vmem>>, %arg7: memref<128x128xf32, #tpu.memory_space<vmem>>) attributes {dimension_semantics = [#tpu.dimension_semantics<parallel>, #tpu.dimension_semantics<parallel>, #tpu.dimension_semantics<arbitrary>], iteration_bounds = array<i64: 1, 1, 2>, scalar_prefetch = 0 : i64, scratch_operands = 1 : i64, tpu.core_type = #tpu.core_type<tc>, window_params = [{transform_indices = @transform_0, window_bounds = array<i64: 128, 256>}, {transform_indices = @transform_1, window_bounds = array<i64: 256, 128>}, {transform_indices = @transform_2, window_bounds = array<i64: 128, 128>}, {transform_indices = @transform_3, window_bounds = array<i64: 1, 8, 128>}]} {
    %c0_i32 = arith.constant 0 : i32
    %0 = arith.cmpi eq, %arg2, %c0_i32 : i32
    %1 = arith.extui %0 : i1 to i32
    %c0_i32_0 = arith.constant 0 : i32
    %2 = arith.cmpi ne, %1, %c0_i32_0 : i32
    scf.if %2 {
      %cst_9 = arith.constant 0.000000e+00 : f32
      %12 = vector.broadcast %cst_9 : f32 to vector<128x128xf32>
      %c0_10 = arith.constant 0 : index
      %c0_11 = arith.constant 0 : index
      %13 = vector.load %arg7[%c0_10, %c0_11] : memref<128x128xf32, #tpu.memory_space<vmem>>, vector<128x128xf32>
      tpu.vector_store %arg7[%c0_10, %c0_11], %12 {strides = array<i32>} : memref<128x128xf32, #tpu.memory_space<vmem>>, vector<128x128xf32>,
    } else {
    }
    %c0 = arith.constant 0 : index
    %c0_1 = arith.constant 0 : index
    %3 = vector.load %arg7[%c0, %c0_1] : memref<128x128xf32, #tpu.memory_space<vmem>>, vector<128x128xf32>
    %c0_2 = arith.constant 0 : index
    %c0_3 = arith.constant 0 : index
    %4 = vector.load %arg3[%c0_2, %c0_3] : memref<128x256xbf16, #tpu.memory_space<vmem>>, vector<128x256xbf16>
    %c0_4 = arith.constant 0 : index
    %c0_5 = arith.constant 0 : index
    %5 = vector.load %arg4[%c0_4, %c0_5] : memref<256x128xbf16, #tpu.memory_space<vmem>>, vector<256x128xbf16>
    %cst = arith.constant dense<0.000000e+00> : vector<128x128xf32>
    %6 = tpu.matmul %4, %5, %cst {dimension_numbers = #tpu.dot_dimension_numbers<[1], [0], [0], [1], [0, 0, 1, 1], [], []>} : vector<128x256xbf16>, vector<256x128xbf16>, vector<128x128xf32> -> vector<128x128xf32>
    %7 = arith.addf %3, %6 : vector<128x128xf32>
    %c0_6 = arith.constant 0 : index
    %c0_7 = arith.constant 0 : index
    %8 = vector.load %arg7[%c0_6, %c0_7] : memref<128x128xf32, #tpu.memory_space<vmem>>, vector<128x128xf32>
    tpu.vector_store %arg7[%c0_6, %c0_7], %7 {strides = array<i32>} : memref<128x128xf32, #tpu.memory_space<vmem>>, vector<128x128xf32>,
    %c1_i32 = arith.constant 1 : i32
    %9 = arith.cmpi eq, %arg2, %c1_i32 : i32
    %10 = arith.extui %9 : i1 to i32
    %c0_i32_8 = arith.constant 0 : i32
    %11 = arith.cmpi ne, %10, %c0_i32_8 : i32
    scf.if %11 {
      %c0_9 = arith.constant 0 : index
      %c0_10 = arith.constant 0 : index
      %12 = vector.load %arg7[%c0_9, %c0_10] : memref<128x128xf32, #tpu.memory_space<vmem>>, vector<128x128xf32>
      %c0_11 = arith.constant 0 : index
      %c0_12 = arith.constant 0 : index
      %13 = vector.load %arg5[%c0_11, %c0_12] : memref<128x128xf32, #tpu.memory_space<vmem>>, vector<128x128xf32>
      tpu.vector_store %arg5[%c0_11, %c0_12], %12 {strides = array<i32>} : memref<128x128xf32, #tpu.memory_space<vmem>>, vector<128x128xf32>,
      %cst_13 = arith.constant dense<0.000000e+00> : vector<128xf32>
      %14 = vector.multi_reduction <add>, %12, %cst_13 [0] : vector<128x128xf32> to vector<128xf32>
      %15 = vector.shape_cast %14 : vector<128xf32> to vector<1x128xf32>
      %16 = arith.mulf %12, %12 : vector<128x128xf32>
      %cst_14 = arith.constant dense<0.000000e+00> : vector<128xf32>
      %17 = vector.multi_reduction <add>, %16, %cst_14 [0] : vector<128x128xf32> to vector<128xf32>
      %18 = vector.shape_cast %17 : vector<128xf32> to vector<1x128xf32>
      %19 = tpu.iota {dimensions = array<i32: 0>} : vector<8x128xi32>
      %c0_i32_15 = arith.constant 0 : i32
      %20 = vector.broadcast %c0_i32_15 : i32 to vector<8x128xi32>
      %21 = arith.cmpi eq, %19, %20 : vector<8x128xi32>
      %22 = vector.shape_cast %15 : vector<1x128xf32> to vector<1x128xf32>
      %23 = vector.broadcast %22 : vector<1x128xf32> to vector<8x128xf32>
      %24 = vector.shape_cast %18 : vector<1x128xf32> to vector<1x128xf32>
      %25 = vector.broadcast %24 : vector<1x128xf32> to vector<8x128xf32>
      %26 = arith.select %21, %23, %25 : vector<8x128xi1>, vector<8x128xf32>
      %c0_16 = arith.constant 0 : index
      %c0_17 = arith.constant 0 : index
      %c0_18 = arith.constant 0 : index
      %27 = vector.load %arg6[%c0_16, %c0_17, %c0_18] : memref<1x8x128xf32, #tpu.memory_space<vmem>>, vector<1x8x128xf32>
      %28 = vector.shape_cast %27 : vector<1x8x128xf32> to vector<8x128xf32>
      %29 = vector.shape_cast %26 : vector<8x128xf32> to vector<1x8x128xf32>
      tpu.vector_store %arg6[%c0_16, %c0_17, %c0_18], %29 {strides = array<i32>} : memref<1x8x128xf32, #tpu.memory_space<vmem>>, vector<1x8x128xf32>,
    } else {
    }
    return
  }
  func.func @transform_0(%arg0: i32, %arg1: i32, %arg2: i32) -> (i32, i32) {
    %c0_i32 = arith.constant 0 : i32
    return %arg0, %arg2 : i32, i32
  }
  func.func @transform_1(%arg0: i32, %arg1: i32, %arg2: i32) -> (i32, i32) {
    %c0_i32 = arith.constant 0 : i32
    return %arg2, %arg1 : i32, i32
  }
  func.func @transform_2(%arg0: i32, %arg1: i32, %arg2: i32) -> (i32, i32) {
    %c0_i32 = arith.constant 0 : i32
    return %arg0, %arg1 : i32, i32
  }
  func.func @transform_3(%arg0: i32, %arg1: i32, %arg2: i32) -> (i32, i32, i32) {
    %c0_i32 = arith.constant 0 : i32
    %c0_i32_0 = arith.constant 0 : i32
    return %arg0, %c0_i32, %arg1 : i32, i32, i32
  }
}

</mosaic_0001>

<bundles_post_ra>
// kernel: tpu_custom_call.1
= control target key start
LH: loop header
LB: loop body
LE: loop exit
PB: predicated region body
PF: predicated region fallthrough
CT: control target
= control target key end

     0   :  { %9 = vsyncpa [#allocation4], 0  ;;  %s1533_s0 = inlined_call_operand.hbm [shape: bf16[128,512], index: 0, kind: input, shape index: {}]   ;;  %s1534_s1 = inlined_call_operand.hbm [shape: bf16[512,128], index: 1, kind: input, shape index: {}]   ;;  %s1535_s2 = inlined_call_operand.hbm [shape: f32[128,128], index: 2, kind: output, shape index: {0}]   ;;  %s1536_s3 = inlined_call_operand.hbm [shape: f32[1,8,128], index: 3, kind: output, shape index: {1}]  }
   0x1   :  { %11 = vsyncpa [#allocation4 + $0x1], 0 }
   0x2   :  { %12 = vsyncpa [#allocation7], 0 }
   0x3   :  { %14 = vsyncpa [#allocation7 + $0x1], 0 }
   0x4   :  { %15 = vsyncpa [#allocation5], 0 }
   0x5   :  { %16 = vsyncpa [#allocation10], 0  ;;  %s1341_s12 = smov 0   ;;  %s1343_s13 = smov 0  }
   0x6   :  { %s1345_s14 = smov 0   ;;  %s1347_s15 = smov 0  }
   0x7   :  { %s1349_s16 = smov 0   ;;  %s1351_s17 = smov 0  }
   0x8 LB: > { %s885_s18 = sadd.s32 4294967295, %s1307_s17   ;;  %s34_s19 = sadd.s32 1, %s1303_s16  ;;  %s1307_s17 = sphi %s1351_s17, %s22_s17   ;;  %s1303_s16 = sphi %s1349_s16, %s1546_s16   ;;  %s1299_s15 = sphi %s1347_s15, %s1545_s15   ;;  %s1295_s14 = sphi %s1345_s14, %s1544_s14   ;;  %s1291_s13 = sphi %s1343_s13, %s1543_s13   ;;  %s1287_s12 = sphi %s1341_s12, %s1542_s12  }
   0x9   : > { %p35_p0 = scmp.ge.s32.totalorder %s34_s19, 2  ;;  %s50_s20 = sadd.s32 1, %s1295_s14 }
   0xa   : > { %p57_p1 = scmp.ne.s32.totalorder %s1295_s14, %s1291_s13  ;;  %p58_p2 = scmp.eq.s32.totalorder %s1307_s17, 0 }
   0xb   : > { %s1548_s19 = smov (%p35_p0, %s34_s19), 0  ;;  %p63_p4 = scmp.ne.s32.totalorder %s1291_s13, %s1287_s12 }
   0xc   : > { %p1377_p3 = por %p58_p2, %p57_p1  ;;  %s46_s22 = ssub.s32 %s1303_s16, %s1548_s19 }
   0xd   : > { %p64_p5 = scmp.eq.s32.totalorder %s885_s18, 0  ;;  %p48_p6 = scmp.eq.s32.totalorder %s46_s22, 0 }
   0xe   : > { %p1038_p8 = scmp.lt.s32.totalorder %s1307_s17, 2  ;;  %s1395_s25 = sand.u32 1, %s1295_s14  }
   0xf   : > { %p1386_p7 = por %p64_p5, %p63_p4  ;;  %s937_s26 = sshll.u32 %s1303_s16, 7 }
  0x10   : > { %s1392_s24 = scalar_select %p48_p6, %s1295_s14, %s50_s20  }
  0x11   : > { %s888_s27 = sshll.u32 %s1395_s25, 7  ;;  %s184_s30 = scalar_lea.hbm %s1533_s0, %s937_s26 }
  0x12   : > { %s175_s4 = scalar_lea.vmem [#allocation3], %s888_s27  ;;  %p1406_p9 = pnand %p1038_p8, %p1377_p3 }
  0x13   : > { %s185_s5 = sshll.u32 %s175_s4, 4  ;;  %p894_p10 = scmp.ge.s32.totalorder %s1307_s17, 1  ;;  %s186_s5 = int_to_ptr.vmem [resolvable:$true] %s185_s5 }
  0x14   : > { %s172_s7 = scalar_lea.sflag [#allocation4], %s1395_s25  ;;  %p1143_p11 = pneg %p1406_p9 }
  0x15   : > { %s1154_s8 = scalar_lea.vmem %s186_s5, 2048  ;;  %s1309_s9 = smov [#allocation3]  }
  0x16   : > { %p1155_p12 = scmp.ne.s32.totalorder %s186_s5, %s1154_s8  ;;  %s1159_s10 = sshll.u32 %s1309_s9, 4  ;;  %s1160_s10 = int_to_ptr.vmem [resolvable:$false] %s1159_s10 }
  0x17   : > { %s1161_s11 = scalar_lea.vmem %s1160_s10, 4096  ;;  %p1162_p1 = scmp.lt.s32.totalorder %s186_s5, %s1160_s10 }
  0x18   : > { %p1157_p13 = pnand %p1155_p12, %p1143_p11  ;;  %p1163_p2 = scmp.lt.s32.totalorder %s1161_s11, %s1154_s8 }
  0x1a   : > { %p1158_p0 = pneg %p1157_p13  ;;  %p1164_p3 = por %p1163_p2, %p1162_p1 }
  0x1c   : > { %p1165_p4 = pnand %p1164_p3, %p1158_p0 }
  0x1e   : > { %1168 = shalt.err (!%p1165_p4)
}
  0x1f   : > { %s1310_s12 = smov 256   ;;  %s1311_s20 = smov 128  }
  0x20   : > { %s1312_s21 = smov 8   ;;  %p215_p5 = scmp.lt.s32.totalorder %s1307_s17, 3 }
  0x21   : > { %1034 = dma.hbm_to_vmem [thread:$0]  (!%p1406_p9), %s184_s30, 2048, %s186_s5, %s172_s7, %s1310_s12, %s1311_s20, %s1312_s21  }
  0x22   : > { %s938_s22 = sshll.u32 %s1303_s16, 11  ;;  %p1423_p6 = pnand %p894_p10, %p215_p5 }
  0x23   : > { %s206_s4 = scalar_lea.hbm %s1534_s1, %s938_s22  ;;  %s199_s8 = scalar_lea.vmem [#allocation6], %s888_s27 }
  0x24   : > { %s207_s9 = sshll.u32 %s199_s8, 4  ;;  %s196_s10 = scalar_lea.sflag [#allocation7], %s1395_s25  ;;  %s208_s9 = int_to_ptr.vmem [resolvable:$true] %s207_s9 }
  0x25   : > { %s1182_s11 = scalar_lea.vmem %s208_s9, 2048  ;;  %s1313_s30 = smov [#allocation6]  }
  0x26   : > { %p1183_p8 = scmp.ne.s32.totalorder %s208_s9, %s1182_s11  ;;  %s1187_s5 = sshll.u32 %s1313_s30, 4  ;;  %s1188_s5 = int_to_ptr.vmem [resolvable:$false] %s1187_s5 }
  0x27   : > { %s1189_s7 = scalar_lea.vmem %s1188_s5, 4096  ;;  %p1190_p10 = scmp.lt.s32.totalorder %s208_s9, %s1188_s5 }
  0x28   : > { %p1185_p12 = pnand %p1183_p8, %p1143_p11  ;;  %p1191_p0 = scmp.lt.s32.totalorder %s1189_s7, %s1182_s11 }
  0x2a   : > { %p1186_p13 = pneg %p1185_p12  ;;  %p1192_p1 = por %p1191_p0, %p1190_p10 }
  0x2c   : > { %p1193_p2 = pnand %p1192_p1, %p1186_p13 }
  0x2e   : > { %1196 = shalt.err (!%p1193_p2)
}
  0x2f   : > { %s1314_s12 = smov 64   ;;  %s1315_s27 = smov 4  }
  0x30   : > { %1037 = dma.hbm_to_vmem [thread:$0]  (!%p1406_p9), %s206_s4, 2048, %s208_s9, %s196_s10, %s1314_s12, %s1314_s12, %s1315_s27  }
  0x31   : > { %219 = sbr.rel (%p1423_p6) target bundleno = 412 (0x19c), region = 28  ;;  %s221_s25 = sand.u32 (!%p1423_p6), 1, %s1291_s13  }
  0x32   : > { %s895_s20 = sshll.u32 (!%p1423_p6), %s221_s25, 7  ;;  %s222_s21 = scalar_lea.sflag (!%p1423_p6), [#allocation4], %s221_s25 }
  0x33   : > { %s1441_s22 = scalar_lea.vmem (!%p1423_p6), [#allocation3], %s895_s20 }
  0x36   : > { %1270 = dma.done.wait (%p1386_p7), %s222_s21, 2048  }
  0x37   : > { %1272 = vsyncadd (%p1386_p7), %s222_s21, 4294965248  ;;  %s231_s28 = scalar_lea.sflag [#allocation7], %s221_s25  ;;  %s1447_s29 = scalar_lea.vmem [#allocation6], %s895_s20 }
  0x38   : > { %1274 = dma.done.wait (%p1386_p7), %s231_s28, 2048  }
  0x39   : > { %1276 = vsyncadd (%p1386_p7), %s231_s28, 4294965248  ;;  %p897_p9 = scmp.ne.s32.totalorder %s1299_s15, 0 }
  0x3b   : > { %265 = sbr.rel (%p897_p9) target bundleno = 73 (0x49), region = 40 }
  0x40   : > { %v1316_v0 = vmov 0.0  }
  0x41   : > { %266 = vst [vmem:[#allocation2 + $0x30] sm:$0xff] %v1316_v0  ;;  %267 = vst [vmem:[#allocation2] sm:$0xff] %v1316_v0 }
  0x42   : > { %268 = vst [vmem:[#allocation2 + $0x58] sm:$0xff] %v1316_v0  ;;  %269 = vst [vmem:[#allocation2 + $0x18] sm:$0xff] %v1316_v0 }
  0x43   : > { %270 = vst [vmem:[#allocation2 + $0x50] sm:$0xff] %v1316_v0  ;;  %271 = vst [vmem:[#allocation2 + $0x68] sm:$0xff] %v1316_v0 }
  0x44   : > { %272 = vst [vmem:[#allocation2 + $0x8] sm:$0xff] %v1316_v0  ;;  %273 = vst [vmem:[#allocation2 + $0x48] sm:$0xff] %v1316_v0 }
  0x45   : > { %274 = vst [vmem:[#allocation2 + $0x40] sm:$0xff] %v1316_v0  ;;  %275 = vst [vmem:[#allocation2 + $0x20] sm:$0xff] %v1316_v0 }
  0x46   : > { %276 = vst [vmem:[#allocation2 + $0x10] sm:$0xff] %v1316_v0  ;;  %277 = vst [vmem:[#allocation2 + $0x38] sm:$0xff] %v1316_v0 }
  0x47   : > { %278 = vst [vmem:[#allocation2 + $0x60] sm:$0xff] %v1316_v0  ;;  %279 = vst [vmem:[#allocation2 + $0x70] sm:$0xff] %v1316_v0 }
  0x48   : > { %280 = vst [vmem:[#allocation2 + $0x78] sm:$0xff] %v1316_v0  ;;  %281 = vst [vmem:[#allocation2 + $0x28] sm:$0xff] %v1316_v0 }
  0x49 PF: > { %v1101_v1 = vld [vmem:[%s1447_s29 + $0x78] sm:$0xff]   ;;  %v1103_v3 = vld [vmem:[%s1447_s29 + $0x70] sm:$0xff]   ;;  %v1105_v5 = vld [vmem:[%s1447_s29 + $0x68] sm:$0xff]   ;;  %p930_p7 = scmp.ne.s32.totalorder %s1299_s15, 1 }
  0x4a   : > { %v1102_v2 = vld [vmem:[%s1447_s29 + $0x38] sm:$0xff]   ;;  %939 = vmatprep.subr.bf16.mxu0 %v1101_v1  ;;  %1003 = vmatprep.subr.bf16.mxu1 %v1101_v1  ;;  %v1104_v4 = vld [vmem:[%s1447_s29 + $0x30] sm:$0xff]   ;;  %v1106_v6 = vld [vmem:[%s1447_s29 + $0x28] sm:$0xff]  }
  0x4b   : > { %940 = vmatpush3.bf16.msra.mxu0 %v1102_v2  ;;  %1011 = vmatpush3.bf16.msra.mxu1 %v1102_v2  ;;  %v1107_v7 = vld [vmem:[%s1447_s29 + $0x60] sm:$0xff]   ;;  %v1109_v9 = vld [vmem:[%s1447_s29 + $0x58] sm:$0xff]   ;;  %v1111_v11 = vld [vmem:[%s1447_s29 + $0x50] sm:$0xff]  }
  0x4c   : > { %941 = vmatprep.subr.bf16.mxu0 %v1103_v3  ;;  %1004 = vmatprep.subr.bf16.mxu1 %v1103_v3  ;;  %v1108_v8 = vld [vmem:[%s1447_s29 + $0x20] sm:$0xff]   ;;  %v1110_v10 = vld [vmem:[%s1447_s29 + $0x18] sm:$0xff]   ;;  %v1112_v14 = vld [vmem:[%s1447_s29 + $0x10] sm:$0xff]  }
  0x4d   : > { %v1119_v12 = vld [vmem:[%s1441_s22 + $0x4] ss:$8 sps:$4 sm:$0xff]   ;;  %v1117_v19 = vld [vmem:[%s1441_s22] ss:$8 sps:$4 sm:$0xff]   ;;  %v1123_v21 = vld [vmem:[%s1441_s22 + $0x14] ss:$8 sps:$4 sm:$0xff]  }
  0x4e   : > { %v1122_v13 = vld [vmem:[%s1441_s22 + $0x44] ss:$8 sps:$4 sm:$0xff]   ;;  %554 = vmatprep.mubr.bf16.mxu0 %v1119_v12  ;;  %v1120_v20 = vld [vmem:[%s1441_s22 + $0x40] ss:$8 sps:$4 sm:$0xff]   ;;  %v1125_v22 = vld [vmem:[%s1441_s22 + $0x54] ss:$8 sps:$4 sm:$0xff]  }
  0x4f   : > { %942 = vmatpush3.bf16.msra.mxu0 %v1104_v4  ;;  %1012 = vmatpush3.bf16.msra.mxu1 %v1104_v4  ;;  %v1113_v15 = vld [vmem:[%s1447_s29 + $0x48] sm:$0xff]   ;;  %v1115_v17 = vld [vmem:[%s1447_s29 + $0x40] sm:$0xff]   ;;  %v1127_v23 = vld [vmem:[%s1441_s22 + $0x10] ss:$8 sps:$4 sm:$0xff]  }
  0x50   : > { %943 = vmatprep.subr.bf16.mxu0 %v1105_v5  ;;  %1005 = vmatprep.subr.bf16.mxu1 %v1105_v5  ;;  %v1114_v16 = vld [vmem:[%s1447_s29 + $0x8] sm:$0xff]   ;;  %v1116_v18 = vld [vmem:[%s1447_s29] sm:$0xff]   ;;  %v1128_v24 = vld [vmem:[%s1441_s22 + $0x50] ss:$8 sps:$4 sm:$0xff]  }
  0x51   : > { %586 = vmatprep.mubr.bf16.mxu1 %v1122_v13  ;;  %v1129_v25 = vld [vmem:[%s1441_s22 + $0x24] ss:$8 sps:$4 sm:$0xff]   ;;  %v1133_v27 = vld [vmem:[%s1441_s22 + $0x20] ss:$8 sps:$4 sm:$0xff]   ;;  %v1135_v29 = vld [vmem:[%s1441_s22 + $0x34] ss:$8 sps:$4 sm:$0xff]  }
  0x52   : > { %v1131_v26 = vld [vmem:[%s1441_s22 + $0x64] ss:$8 sps:$4 sm:$0xff]   ;;  %v1134_v28 = vld [vmem:[%s1441_s22 + $0x60] ss:$8 sps:$4 sm:$0xff]   ;;  %v1137_v30 = vld [vmem:[%s1441_s22 + $0x74] ss:$8 sps:$4 sm:$0xff]  }
  0x53   : > { %944 = vmatpush3.bf16.msra.mxu0 %v1106_v6  ;;  %1013 = vmatpush3.bf16.msra.mxu1 %v1106_v6  ;;  %v1139_v31 = vld [vmem:[%s1441_s22 + $0x30] ss:$8 sps:$4 sm:$0xff]   ;;  %v290_v37 = vld [vmem:[#allocation2 + $0x40] sm:$0xff] }
  0x54   : > { %945 = vmatprep.subr.bf16.mxu0 %v1107_v7  ;;  %1006 = vmatprep.subr.bf16.mxu1 %v1107_v7  ;;  %v1140_v32 = vld [vmem:[%s1441_s22 + $0x70] ss:$8 sps:$4 sm:$0xff]   ;;  %v283_v45 = vld [vmem:[#allocation2] sm:$0xff] }
  0x55   : > { %v282_v35 = vld [vmem:[#allocation2 + $0x30] sm:$0xff]  ;;  %v291_v47 = vld [vmem:[#allocation2 + $0x20] sm:$0xff]  ;;  %v284_v55 = vld [vmem:[#allocation2 + $0x58] sm:$0xff] }
  0x56   : > { %v292_v57 = vld [vmem:[#allocation2 + $0x10] sm:$0xff]  ;;  %v285_v1 = vld [vmem:[#allocation2 + $0x18] sm:$0xff]  ;;  %v294_v13 = vld [vmem:[#allocation2 + $0x60] sm:$0xff] }
  0x57   : > { %946 = vmatpush3.bf16.msra.mxu0 %v1108_v8  ;;  %1014 = vmatpush3.bf16.msra.mxu1 %v1108_v8  ;;  %v293_v3 = vld [vmem:[#allocation2 + $0x38] sm:$0xff] }
  0x58   : > { %947 = vmatprep.subr.bf16.mxu0 %v1109_v9  ;;  %1007 = vmatprep.subr.bf16.mxu1 %v1109_v9 }
  0x5b   : > { %948 = vmatpush3.bf16.msra.mxu0 %v1110_v10  ;;  %1015 = vmatpush3.bf16.msra.mxu1 %v1110_v10 }
  0x5c   : > { %949 = vmatprep.subr.bf16.mxu0 %v1111_v11  ;;  %1008 = vmatprep.subr.bf16.mxu1 %v1111_v11  ;;  %v286_v11 = vld [vmem:[#allocation2 + $0x50] sm:$0xff] }
  0x5f   : > { %950 = vmatpush3.bf16.msra.mxu0 %v1112_v14  ;;  %1016 = vmatpush3.bf16.msra.mxu1 %v1112_v14 }
  0x60   : > { %951 = vmatprep.subr.bf16.mxu0 %v1113_v15  ;;  %1009 = vmatprep.subr.bf16.mxu1 %v1113_v15 }
  0x63   : > { %952 = vmatpush3.bf16.msra.mxu0 %v1114_v16  ;;  %1017 = vmatpush3.bf16.msra.mxu1 %v1114_v16 }
  0x64   : > { %953 = vmatprep.subr.bf16.mxu0 %v1115_v17  ;;  %1010 = vmatprep.subr.bf16.mxu1 %v1115_v17 }
  0x67   : > { %954 = vmatpush3.bf16.msra.mxu0 %v1116_v18  ;;  %1018 = vmatpush3.bf16.msra.mxu1 %v1116_v18 }
  0x6a   : > { %555 = vmatmul.mubr.bf16.vlgmr.msra.gmra.mxu0 %v1117_v19  ;;  %587 = vmatmul.mubr.bf16.vlgmr.msra.gmra.mxu1 %v1120_v20 }
  0x6b   : > { %562 = vmatprep.mubr.bf16.mxu0 %v1123_v21  ;;  %594 = vmatprep.mubr.bf16.mxu1 %v1125_v22  ;;  %v287_v21 = vld [vmem:[#allocation2 + $0x68] sm:$0xff] }
  0x72   : > { %563 = vmatmul.mubr.bf16.gmra.mxu0 %v1127_v23  ;;  %595 = vmatmul.mubr.bf16.gmra.mxu1 %v1128_v24  ;;  %v295_v23 = vld [vmem:[#allocation2 + $0x70] sm:$0xff] }
  0x73   : > { %570 = vmatprep.mubr.bf16.mxu0 %v1129_v25  ;;  %602 = vmatprep.mubr.bf16.mxu1 %v1131_v26 }
  0x7a   : > { %571 = vmatmul.mubr.bf16.gmra.mxu0 %v1133_v27  ;;  %603 = vmatmul.mubr.bf16.gmra.mxu1 %v1134_v28 }
  0x7b   : > { %578 = vmatprep.mubr.bf16.mxu0 %v1135_v29  ;;  %610 = vmatprep.mubr.bf16.mxu1 %v1137_v30 }
  0x82   : > { %579 = vmatmul.mubr.bf16.gmra.mxu0 %v1139_v31  ;;  %611 = vmatmul.mubr.bf16.gmra.mxu1 %v1140_v32  ;;  %v288_v31 = vld [vmem:[#allocation2 + $0x8] sm:$0xff] }
 0x12a   : > { %v955_v33 = vpop.f32.mrf.mxu0  ;;  %v979_v34 = vpop.f32.mrf.mxu1 }
 0x12c   : > { %v956_v36 = vpop.f32.mrf.mxu0  ;;  %v980_v38 = vpop.f32.mrf.mxu1 }
 0x12d   : > { %v957_v39 = vadd.f32 %v956_v36, %v955_v33  ;;  %v981_v40 = vadd.f32 %v980_v38, %v979_v34  ;;  %v296_v33 = vld [vmem:[#allocation2 + $0x78] sm:$0xff] }
 0x12e   : > { %v958_v41 = vpop.f32.mrf.mxu0  ;;  %v982_v42 = vpop.f32.mrf.mxu1 }
 0x12f   : > { %v619_v43 = vadd.f32 %v957_v39, %v282_v35  ;;  %v627_v44 = vadd.f32 %v981_v40, %v290_v37 }
 0x130   : > { %v959_v46 = vpop.f32.mrf.mxu0  ;;  %v983_v48 = vpop.f32.mrf.mxu1 }
 0x131   : > { %635 = vst [vmem:[#allocation2 + $0x30] sm:$0xff] %v619_v43  ;;  %643 = vst [vmem:[#allocation2 + $0x40] sm:$0xff] %v627_v44  ;;  %v960_v49 = vadd.f32 %v959_v46, %v958_v41  ;;  %v984_v50 = vadd.f32 %v983_v48, %v982_v42  ;;  %v289_v41 = vld [vmem:[#allocation2 + $0x48] sm:$0xff] }
 0x132   : > { %v961_v51 = vpop.f32.mrf.mxu0  ;;  %v985_v52 = vpop.f32.mrf.mxu1  ;;  %v297_v43 = vld [vmem:[#allocation2 + $0x28] sm:$0xff] }
 0x133   : > { %v620_v53 = vadd.f32 %v960_v49, %v283_v45  ;;  %v628_v54 = vadd.f32 %v984_v50, %v291_v47 }
 0x134   : > { %v962_v56 = vpop.f32.mrf.mxu0  ;;  %v986_v58 = vpop.f32.mrf.mxu1 }
 0x135   : > { %636 = vst [vmem:[#allocation2] sm:$0xff] %v620_v53  ;;  %644 = vst [vmem:[#allocation2 + $0x20] sm:$0xff] %v628_v54  ;;  %v963_v59 = vadd.f32 %v962_v56, %v961_v51  ;;  %v987_v60 = vadd.f32 %v986_v58, %v985_v52 }
 0x136   : > { %v964_v61 = vpop.f32.mrf.mxu0  ;;  %v988_v62 = vpop.f32.mrf.mxu1 }
 0x137   : > { %v621_v63 = vadd.f32 %v963_v59, %v284_v55  ;;  %v629_v0 = vadd.f32 %v987_v60, %v292_v57 }
 0x138   : > { %v965_v2 = vpop.f32.mrf.mxu0  ;;  %v989_v4 = vpop.f32.mrf.mxu1 }
 0x139   : > { %637 = vst [vmem:[#allocation2 + $0x58] sm:$0xff] %v621_v63  ;;  %645 = vst [vmem:[#allocation2 + $0x10] sm:$0xff] %v629_v0  ;;  %v966_v5 = vadd.f32 %v965_v2, %v964_v61  ;;  %v990_v6 = vadd.f32 %v989_v4, %v988_v62 }
 0x13a   : > { %v967_v7 = vpop.f32.mrf.mxu0  ;;  %v991_v8 = vpop.f32.mrf.mxu1 }
 0x13b   : > { %v622_v9 = vadd.f32 %v966_v5, %v285_v1  ;;  %v630_v10 = vadd.f32 %v990_v6, %v293_v3 }
 0x13c   : > { %v968_v12 = vpop.f32.mrf.mxu0  ;;  %v992_v14 = vpop.f32.mrf.mxu1 }
 0x13d   : > { %638 = vst [vmem:[#allocation2 + $0x18] sm:$0xff] %v622_v9  ;;  %646 = vst [vmem:[#allocation2 + $0x38] sm:$0xff] %v630_v10  ;;  %v969_v15 = vadd.f32 %v968_v12, %v967_v7  ;;  %v993_v16 = vadd.f32 %v992_v14, %v991_v8 }
 0x13e   : > { %v970_v17 = vpop.f32.mrf.mxu0  ;;  %v994_v18 = vpop.f32.mrf.mxu1 }
 0x13f   : > { %v623_v19 = vadd.f32 %v969_v15, %v286_v11  ;;  %v631_v20 = vadd.f32 %v993_v16, %v294_v13 }
 0x140   : > { %v971_v22 = vpop.f32.mrf.mxu0  ;;  %v995_v24 = vpop.f32.mrf.mxu1 }
 0x141   : > { %639 = vst [vmem:[#allocation2 + $0x50] sm:$0xff] %v623_v19  ;;  %647 = vst [vmem:[#allocation2 + $0x60] sm:$0xff] %v631_v20  ;;  %v972_v25 = vadd.f32 %v971_v22, %v970_v17  ;;  %v996_v26 = vadd.f32 %v995_v24, %v994_v18 }
 0x142   : > { %v973_v27 = vpop.f32.mrf.mxu0  ;;  %v997_v28 = vpop.f32.mrf.mxu1 }
 0x143   : > { %v624_v29 = vadd.f32 %v972_v25, %v287_v21  ;;  %v632_v30 = vadd.f32 %v996_v26, %v295_v23 }
 0x144   : > { %v974_v32 = vpop.f32.mrf.mxu0  ;;  %v998_v34 = vpop.f32.mrf.mxu1 }
 0x145   : > { %640 = vst [vmem:[#allocation2 + $0x68] sm:$0xff] %v624_v29  ;;  %648 = vst [vmem:[#allocation2 + $0x70] sm:$0xff] %v632_v30  ;;  %v975_v35 = vadd.f32 %v974_v32, %v973_v27  ;;  %v999_v36 = vadd.f32 %v998_v34, %v997_v28 }
 0x146   : > { %v976_v37 = vpop.f32.mrf.mxu0  ;;  %v1000_v38 = vpop.f32.mrf.mxu1 }
 0x147   : > { %v625_v39 = vadd.f32 %v975_v35, %v288_v31  ;;  %v633_v40 = vadd.f32 %v999_v36, %v296_v33 }
 0x148   : > { %v977_v42 = vpop.f32.mrf.mxu0  ;;  %v1001_v44 = vpop.f32.mrf.mxu1 }
 0x149   : > { %641 = vst [vmem:[#allocation2 + $0x8] sm:$0xff] %v625_v39  ;;  %649 = vst [vmem:[#allocation2 + $0x78] sm:$0xff] %v633_v40  ;;  %v978_v45 = vadd.f32 %v977_v42, %v976_v37  ;;  %v1002_v46 = vadd.f32 %v1001_v44, %v1000_v38  ;;  %654 = sbr.rel (%p930_p7) target bundleno = 381 (0x17d), region = 44 }
 0x14b   : > { %v626_v47 = vadd.f32 %v978_v45, %v289_v41  ;;  %v634_v48 = vadd.f32 %v1002_v46, %v297_v43 }
 0x14d   : > { %642 = vst [vmem:[#allocation2 + $0x48] sm:$0xff] %v626_v47  ;;  %650 = vst [vmem:[#allocation2 + $0x28] sm:$0xff] %v634_v48 }
 0x14e   : > { %v655_v49 = vld [vmem:[#allocation2 + $0x30] sm:$0xff]  ;;  %v656_v50 = vld [vmem:[#allocation2] sm:$0xff]  ;;  %v657_v51 = vld [vmem:[#allocation2 + $0x58] sm:$0xff] }
 0x14f   : > { %671 = vst [vmem:[#allocation8] sm:$0xff] %v655_v49  ;;  %v708_v52 = vmul.f32 %v655_v49, %v655_v49  ;;  %672 = vst [vmem:[#allocation8 + $0x8] sm:$0xff] %v656_v50  ;;  %v687_v53 = vadd.f32 %v656_v50, %v655_v49  ;;  %v709_v54 = vmul.f32 %v656_v50, %v656_v50  ;;  %v658_v56 = vld [vmem:[#allocation2 + $0x18] sm:$0xff]  ;;  %v659_v57 = vld [vmem:[#allocation2 + $0x50] sm:$0xff]  ;;  %v745_v50 = vlaneseq }
 0x150   : > { %673 = vst [vmem:[#allocation8 + $0x10] sm:$0xff] %v657_v51  ;;  %v710_v55 = vmul.f32 %v657_v51, %v657_v51  ;;  %v660_v58 = vld [vmem:[#allocation2 + $0x68] sm:$0xff]  ;;  %674 = vst [vmem:[#allocation8 + $0x18] sm:$0xff] %v658_v56  ;;  %v663_v61 = vld [vmem:[#allocation2 + $0x40] sm:$0xff]  ;;  %v711_v0 = vmul.f32 %v658_v56, %v658_v56  ;;  %v712_v9 = vmul.f32 %v659_v57, %v659_v57 }
 0x151   : > { %675 = vst [vmem:[#allocation8 + $0x20] sm:$0xff] %v659_v57  ;;  %676 = vst [vmem:[#allocation8 + $0x28] sm:$0xff] %v660_v58  ;;  %v661_v59 = vld [vmem:[#allocation2 + $0x8] sm:$0xff]  ;;  %v724_v62 = vadd.f32 %v709_v54, %v708_v52  ;;  %v688_v63 = vadd.f32 %v687_v53, %v657_v51  ;;  %v664_v1 = vld [vmem:[#allocation2 + $0x20] sm:$0xff]  ;;  %v713_v13 = vmul.f32 %v660_v58, %v660_v58 }
 0x152   : > { %677 = vst [vmem:[#allocation8 + $0x30] sm:$0xff] %v661_v59  ;;  %679 = vst [vmem:[#allocation8 + $0x40] sm:$0xff] %v663_v61  ;;  %v665_v2 = vld [vmem:[#allocation2 + $0x10] sm:$0xff]  ;;  %v666_v3 = vld [vmem:[#allocation2 + $0x38] sm:$0xff]  ;;  %v714_v16 = vmul.f32 %v661_v59, %v661_v59  ;;  %v716_v22 = vmul.f32 %v663_v61, %v663_v61  ;;  %v717_v25 = vmul.f32 %v664_v1, %v664_v1 }
 0x153   : > { %680 = vst [vmem:[#allocation8 + $0x48] sm:$0xff] %v664_v1  ;;  %681 = vst [vmem:[#allocation8 + $0x50] sm:$0xff] %v665_v2  ;;  %v667_v4 = vld [vmem:[#allocation2 + $0x60] sm:$0xff]  ;;  %v668_v5 = vld [vmem:[#allocation2 + $0x70] sm:$0xff]  ;;  %v725_v7 = vadd.f32 %v724_v62, %v710_v55  ;;  %v689_v8 = vadd.f32 %v688_v63, %v658_v56  ;;  %v718_v28 = vmul.f32 %v665_v2, %v665_v2  ;;  %v746_v55 = vshrl.u32 %v745_v50, 7 }
 0x154   : > { %v662_v60 = vld [vmem:[#allocation2 + $0x48] sm:$0xff]  ;;  %682 = vst [vmem:[#allocation8 + $0x58] sm:$0xff] %v666_v3  ;;  %v669_v6 = vld [vmem:[#allocation2 + $0x78] sm:$0xff]  ;;  %683 = vst [vmem:[#allocation8 + $0x60] sm:$0xff] %v667_v4  ;;  %v719_v31 = vmul.f32 %v666_v3, %v666_v3  ;;  %v720_v34 = vmul.f32 %v667_v4, %v667_v4  ;;  %v721_v37 = vmul.f32 %v668_v5, %v668_v5 }
 0x155   : > { %678 = vst [vmem:[#allocation8 + $0x38] sm:$0xff] %v662_v60  ;;  %684 = vst [vmem:[#allocation8 + $0x68] sm:$0xff] %v668_v5  ;;  %v670_v10 = vld [vmem:[#allocation2 + $0x28] sm:$0xff]  ;;  %v726_v11 = vadd.f32 %v725_v7, %v711_v0  ;;  %v690_v12 = vadd.f32 %v689_v8, %v659_v57  ;;  %v715_v19 = vmul.f32 %v662_v60, %v662_v60  ;;  %vm747_vm0 = vcmp.eq.s32.totalorder %v746_v55, 0 }
 0x156   : > { %685 = vst [vmem:[#allocation8 + $0x70] sm:$0xff] %v669_v6  ;;  %686 = vst [vmem:[#allocation8 + $0x78] sm:$0xff] %v670_v10  ;;  %v722_v40 = vmul.f32 %v669_v6, %v669_v6  ;;  %v723_v43 = vmul.f32 %v670_v10, %v670_v10 }
 0x157   : > { %v727_v14 = vadd.f32 %v726_v11, %v712_v9  ;;  %v691_v15 = vadd.f32 %v690_v12, %v660_v58 }
 0x159   : > { %v728_v17 = vadd.f32 %v727_v14, %v713_v13  ;;  %v692_v18 = vadd.f32 %v691_v15, %v661_v59 }
 0x15b   : > { %v729_v20 = vadd.f32 %v728_v17, %v714_v16  ;;  %v693_v21 = vadd.f32 %v692_v18, %v662_v60 }
 0x15d   : > { %v730_v23 = vadd.f32 %v729_v20, %v715_v19  ;;  %v694_v24 = vadd.f32 %v693_v21, %v663_v61 }
 0x15f   : > { %v731_v26 = vadd.f32 %v730_v23, %v716_v22  ;;  %v695_v27 = vadd.f32 %v694_v24, %v664_v1 }
 0x161   : > { %v732_v29 = vadd.f32 %v731_v26, %v717_v25  ;;  %v696_v30 = vadd.f32 %v695_v27, %v665_v2 }
 0x163   : > { %v733_v32 = vadd.f32 %v732_v29, %v718_v28  ;;  %v697_v33 = vadd.f32 %v696_v30, %v666_v3 }
 0x165   : > { %v734_v35 = vadd.f32 %v733_v32, %v719_v31  ;;  %v698_v36 = vadd.f32 %v697_v33, %v667_v4 }
 0x167   : > { %v735_v38 = vadd.f32 %v734_v35, %v720_v34  ;;  %v699_v39 = vadd.f32 %v698_v36, %v668_v5 }
 0x169   : > { %v736_v41 = vadd.f32 %v735_v38, %v721_v37  ;;  %v700_v42 = vadd.f32 %v699_v39, %v669_v6 }
 0x16b   : > { %v737_v44 = vadd.f32 %v736_v41, %v722_v40  ;;  %v701_v45 = vadd.f32 %v700_v42, %v670_v10 }
 0x16d   : > { %v702_v46 = vrot.slane %v701_v45, 4  ;;  %v738_v47 = vadd.f32 %v737_v44, %v723_v43 }
 0x16f   : > { %v703_v48 = vadd.f32 %v702_v46, %v701_v45  ;;  %v739_v49 = vrot.slane %v738_v47, 4 }
 0x171   : > { %v704_v51 = vrot.slane %v703_v48, 2  ;;  %v740_v52 = vadd.f32 %v739_v49, %v738_v47 }
 0x173   : > { %v705_v53 = vadd.f32 %v704_v51, %v703_v48  ;;  %v741_v54 = vrot.slane %v740_v52, 2 }
 0x175   : > { %v706_v56 = vrot.slane %v705_v53, 1  ;;  %v742_v57 = vadd.f32 %v741_v54, %v740_v52 }
 0x177   : > { %v707_v58 = vadd.f32 %v706_v56, %v705_v53  ;;  %v743_v59 = vrot.slane %v742_v57, 1 }
 0x179   : > { %v744_v60 = vadd.f32 %v743_v59, %v742_v57 }
 0x17b   : > { %v748_v61 = vsel %vm747_vm0, %v707_v58, %v744_v60 }
 0x17c   : > { %749 = vst [vmem:[#allocation9] sm:$0xff] %v748_v61 }
 0x17d PF: > { %p1489_p11 = scmp.eq.s32.totalorder %s885_s18, 1  ;;  %s1317_s23 = smov [#allocation8]  }
 0x17e   : > { %s760_s6 = sshll.u32 %s1317_s23, 4  ;;  %s761_s6 = int_to_ptr.vmem [resolvable:$true] %s760_s6 }
 0x17f   : > { %s1197_s26 = scalar_lea.vmem %s761_s6, 2048  ;;  %p1204_p6 = scmp.lt.s32.totalorder %s761_s6, %s761_s6 }
 0x180   : > { %p1198_p3 = scmp.ne.s32.totalorder %s761_s6, %s1197_s26  ;;  %p1205_p8 = scmp.lt.s32.totalorder %s1197_s26, %s1197_s26 }
 0x182   : > { %p1199_p4 = pnand %p1198_p3, %p1489_p11  ;;  %p1206_p12 = por %p1205_p8, %p1204_p6 }
 0x184   : > { %p1200_p5 = pneg %p1199_p4 }
 0x186   : > { %p1207_p13 = pnand %p1206_p12, %p1200_p5 }
 0x188   : > { %1210 = shalt.err (!%p1207_p13)
}
 0x189   : > { %s1318_s4 = smov 128   ;;  %s1319_s18 = smov 8  }
 0x18a   : > { %1024 = dma.vmem_to_hbm [thread:$0]  (%p1489_p11), %s761_s6, 2048, %s1535_s2, [#allocation5], %s1318_s4, %s1318_s4, %s1319_s18  }
 0x18b   : > { %s1320_s10 = smov [#allocation9]  }
 0x18c   : > { %s777_s11 = sshll.u32 %s1320_s10, 4  ;;  %s778_s11 = int_to_ptr.vmem [resolvable:$true] %s777_s11 }
 0x18d   : > { %s1221_s30 = scalar_lea.vmem %s778_s11, 128  ;;  %p1228_p2 = scmp.lt.s32.totalorder %s778_s11, %s778_s11 }
 0x18e   : > { %p1222_p10 = scmp.ne.s32.totalorder %s778_s11, %s1221_s30  ;;  %p1229_p9 = scmp.lt.s32.totalorder %s1221_s30, %s1221_s30 }
 0x190   : > { %p1223_p0 = pnand %p1222_p10, %p1489_p11  ;;  %p1230_p7 = por %p1229_p9, %p1228_p2 }
 0x192   : > { %p1224_p1 = pneg %p1223_p0 }
 0x194   : > { %p1231_p3 = pnand %p1230_p7, %p1224_p1 }
 0x196   : > { %1234 = shalt.err (!%p1231_p3)
}
 0x197   : > { %1026 = dma.vmem_to_hbm [thread:$0]  (%p1489_p11), %s778_s11, 128, %s1536_s3, [#allocation10]  }
 0x198   : > { %1278 = dma.done.wait (%p1489_p11), [#allocation5], 2048  }
 0x199   : > { %1280 = vsyncadd (%p1489_p11), [#allocation5], 4294965248 }
 0x19a   : > { %1282 = dma.done.wait (%p1489_p11), [#allocation10], 128  }
 0x19b   : > { %1284 = vsyncadd (%p1489_p11), [#allocation10], 4294967168 }
 0x19c PF: > { %s22_s17 = sadd.s32 1, %s1307_s17   ;;  %s1542_s12 = smov %s1291_s13 }
 0x19d   : > { %p19_p4 = scmp.ge.s32.totalorder %s22_s17, 4   ;;  %s1543_s13 = smov %s1295_s14 }
 0x19e   : > { %s1544_s14 = smov %s1392_s24  ;;  %s1545_s15 = smov %s1303_s16 }
 0x19f   : > { %s1546_s16 = smov %s1548_s19  ;;  %21 = sbr.rel (!%p19_p4) target bundleno = 8 (0x8), region = 96 }
 0x1a4   :  { %794 = vsyncpa [#allocation4], 1 }
 0x1a5   :  { %796 = vsyncpa [#allocation4 + $0x1], 1 }
 0x1a6   :  { %797 = vsyncpa [#allocation7], 1 }
 0x1a7   :  { %799 = vsyncpa [#allocation7 + $0x1], 1 }
 0x1a8   :  { %800 = vsyncpa [#allocation5], 1 }
 0x1a9   :  { %802 = vsyncpa [#allocation5 + $0x1], 1 }
 0x1aa   :  { %803 = vsyncpa [#allocation10], 1 }

</bundles_post_ra>
